<compile_context>
chip_gen: v7x
topology: tpu7x:2x2x1
jax: 0.10.0
libtpu: 0.0.40
codegen_flags: <defaults>
</compile_context>

<pallas_src>
import functools

import jax
import jax.numpy as jnp
from jax import lax
from jax.experimental import pallas as pl
from jax.experimental.pallas import tpu as pltpu


def _conv_bn_kernel(x_ref, w1_ref, b1_ref, w3_ref, b2_ref, mask_ref, o_ref,
                    taps_ref, *, W, n_inner_p):
    """One grid step: a (Cin, L) slab of pixels, L = Nb*H*W lanes.

    x_ref   : (Cin, L)            inputs, batch images adjacent on the lane axis
    w1_ref  : (nInner_p, Cin)     1x1 conv weight, BN1 scale folded in
    b1_ref  : (nInner_p, 1)       BN1 bias
    w3_ref  : (nOut, 9*nInner_p)  3x3 conv weight, BN2 scale folded, taps on K
    b2_ref  : (nOut, 1)           BN2 bias
    mask_ref: (9, L)              per-tap zero-padding validity masks
    o_ref   : (nOut, L)           output
    taps_ref: (9*nInner_p, L)     VMEM scratch holding the stacked taps
    """
    L = x_ref.shape[-1]
    md = taps_ref.dtype

    # ---- 1x1 conv (+ folded BN1 scale) + bias + ReLU: one wide matmul ----
    h = jnp.dot(w1_ref[...], x_ref[...], preferred_element_type=jnp.float32)
    h = jnp.maximum(h + b1_ref[...], 0.0)
    hm = h.astype(md)

    # ---- build the 9 shifted+masked taps, stacked along the K axis -------
    # tap_k[i, p] = h[i, p + dy*W + dx] inside the source image, else 0
    # (zero padding).  pltpu.roll (XLU slot) does the lane shift; the
    # precomputed masks zero every lane whose shifted source falls outside its
    # own H*W image, which also kills cross-image leakage since the Nb images
    # are adjacent on the lane axis.
    k = 0
    for dy in (-1, 0, 1):
        for dx in (-1, 0, 1):
            if dy == 0 and dx == 0:
                tap = hm                                # center: no shift/mask
            else:
                shift = (-(dy * W + dx)) % L
                rolled = pltpu.roll(hm, shift, 1)
                tap = rolled * mask_ref[k:k + 1, :]
            taps_ref[k * n_inner_p:(k + 1) * n_inner_p, :] = tap
            k += 1

    # ---- 3x3 conv (+ folded BN2 scale) as a single fat-K matmul ----------
    acc = jnp.dot(w3_ref[...], taps_ref[...],
                  preferred_element_type=jnp.float32)          # (nOut, L)
    o_ref[...] = jnp.maximum(acc + b2_ref[...], 0.0).astype(o_ref.dtype)


def _round_up(x, m):
    return (x + m - 1) // m * m


def _vmem_capacity_bytes():
    """Per-core VMEM capacity, with a conservative (v7x) fallback."""
    try:
        info = pltpu.get_tpu_info()
        cap = getattr(info, "vmem_capacity_bytes", None)
        if cap:
            return int(cap)
    except Exception:
        pass
    return 64 << 20


def _build_tap_masks(H, W, n_images, dtype):
    """(9, n_images*H*W) validity masks for the 9 taps of a pad=1 3x3 conv."""
    HW = H * W
    q = jnp.arange(n_images * HW, dtype=jnp.int32) % HW
    yy = q // W
    xx = q % W
    rows = []
    for dy in (-1, 0, 1):
        for dx in (-1, 0, 1):
            rows.append((yy + dy >= 0) & (yy + dy < H)
                        & (xx + dx >= 0) & (xx + dx < W))
    return jnp.stack(rows, axis=0).astype(dtype)


def _prepare_params(params, matmul_dtype):
    """Fold BN scales into conv weights host-side, pad nInner to a multiple of
    8, and reshape the 3x3 weight to (nOut, 9*nInner_p) with taps along K."""
    w1, s1, b1, w3, s2, b2 = params
    n_inner, _ = w1.shape
    n_out = w3.shape[2]
    n_inner_p = _round_up(n_inner, 8)
    pad_i = n_inner_p - n_inner

    w1f = jnp.pad(w1 * s1, ((0, pad_i), (0, 0)))                 # rows scaled
    b1p = jnp.pad(b1, ((0, pad_i), (0, 0)))                      # pad -> h=0

    w3f = w3 * s2.reshape(1, 1, n_out, 1)                        # scale nOut
    w3f = jnp.pad(w3f, ((0, 0), (0, 0), (0, 0), (0, pad_i)))     # pad nInner
    w3f = jnp.transpose(w3f, (2, 0, 1, 3)).reshape(n_out, 9 * n_inner_p)

    return (w1f.astype(matmul_dtype), b1p.astype(jnp.float32),
            w3f.astype(matmul_dtype), b2.astype(jnp.float32),
            n_inner_p, n_out)


def _per_image_vmem_bytes(HW, c_in, n_inner_p, n_out, x_bytes, md_bytes,
                          out_bytes):
    est = 2 * c_in * HW * x_bytes          # double-buffered x block
    est += 2 * n_out * HW * out_bytes      # double-buffered y block
    est += 9 * n_inner_p * HW * md_bytes   # stacked-tap scratch
    est += 9 * HW * md_bytes               # resident masks
    est += 4 * n_inner_p * HW * 4          # h / rolled-tap live temporaries
    return est


def _choose_batch_block(N, HW, per_image_bytes, cap_bytes):
    """Pick images-per-step Nb: a divisor of N whose lane width Nb*HW is a
    multiple of 128 (or covers the full lane axis), whose working set fits the
    VMEM cap, preferring a grid of length >= 2 so both v7x TensorCores get
    work."""
    candidates = [d for d in range(1, N + 1)
                  if N % d == 0 and ((d * HW) % 128 == 0 or d == N)]
    fitting = [d for d in candidates if d * per_image_bytes <= cap_bytes]
    pool = fitting if fitting else candidates[:1]
    multi_step = [d for d in pool if N // d >= 2]
    return max(multi_step) if multi_step else min(pool)


def conv_bn_forward(x_nchw, params, *, matmul_dtype=None, batch_block=None):
    """ConvBN forward. x_nchw: (N, Cin, H, W) -> (N, nOut, H, W)."""
    N, c_in, H, W = x_nchw.shape
    HW = H * W

    if matmul_dtype is None:
        # bf16 operands (f32 accumulation) are the fast MXU path on v6e/v7x;
        # the demo keeps the input dtype (f32) to match the f32 XLA reference.
        matmul_dtype = x_nchw.dtype
    matmul_dtype = jnp.dtype(matmul_dtype)

    w1f, b1p, w3f, b2, n_inner_p, n_out = _prepare_params(params, matmul_dtype)

    x_bytes = matmul_dtype.itemsize
    md_bytes = matmul_dtype.itemsize
    out_bytes = jnp.dtype(x_nchw.dtype).itemsize

    capacity = _vmem_capacity_bytes()
    per_img = _per_image_vmem_bytes(HW, c_in, n_inner_p, n_out,
                                    x_bytes, md_bytes, out_bytes)
    if batch_block is None:
        batch_block = _choose_batch_block(N, HW, per_img, capacity // 8)
    assert N % batch_block == 0, (N, batch_block)
    Nb = batch_block
    L = Nb * HW

    # Layout plumbing (plain XLA, outside the kernel): channels on the sublane
    # axis, (batch, H, W) flattened onto the lane axis, so every kernel
    # load/store/matmul is lane-dense and a whole Nb-image block is one GEMM.
    x2 = jnp.transpose(x_nchw.reshape(N, c_in, HW), (1, 0, 2))
    x2 = x2.reshape(c_in, N * HW).astype(matmul_dtype)

    masks = _build_tap_masks(H, W, Nb, matmul_dtype)            # (9, L)

    kernel = functools.partial(_conv_bn_kernel, W=W, n_inner_p=n_inner_p)

    est = per_img * Nb
    est += (w1f.size + w3f.size) * md_bytes + (b1p.size + b2.size) * 4
    vmem_limit = int(min(capacity * 3 // 4, max(32 << 20, 2 * est)))

    out = pl.pallas_call(
        kernel,
        out_shape=jax.ShapeDtypeStruct((n_out, N * HW), x_nchw.dtype),
        grid_spec=pltpu.PrefetchScalarGridSpec(
            num_scalar_prefetch=0,
            grid=(N // Nb,),
            in_specs=[
                pl.BlockSpec((c_in, L), lambda b: (0, b)),
                # Constant-index weight/bias/mask blocks stay VMEM-resident.
                pl.BlockSpec((n_inner_p, c_in), lambda b: (0, 0)),
                pl.BlockSpec((n_inner_p, 1), lambda b: (0, 0)),
                pl.BlockSpec((n_out, 9 * n_inner_p), lambda b: (0, 0)),
                pl.BlockSpec((n_out, 1), lambda b: (0, 0)),
                pl.BlockSpec((9, L), lambda b: (0, 0)),
            ],
            out_specs=pl.BlockSpec((n_out, L), lambda b: (0, b)),
            scratch_shapes=[pltpu.VMEM((9 * n_inner_p, L), matmul_dtype)],
        ),
        compiler_params=pltpu.CompilerParams(
            dimension_semantics=("parallel",),
            vmem_limit_bytes=vmem_limit,
        ),
    )(x2, w1f, b1p, w3f, b2, masks)

    # Back to NCHW (layout plumbing, outside the kernel).
    y = out.reshape(n_out, N, HW).transpose(1, 0, 2).reshape(N, n_out, H, W)
    return y


def make_params(key, nIn, nOut, bottleneck, bnWidth, eps=1e-5):
    """Deterministic synthetic module parameters, eval-mode BN as scale/bias.

    Layouts (module form, folding into weights happens in conv_bn_forward):
      w1: (nInner, nIn)         torch Conv2d(nIn, nInner, 1).weight squeezed
      w3: (3, 3, nOut, nInner)  torch Conv2d(nInner, nOut, 3).weight as (kh,kw,O,I)
      s*, b*: (C, 1)
    """
    nInner = min(nIn, bnWidth * nOut) if bottleneck else nIn
    ks = jax.random.split(key, 10)

    w1 = jax.random.normal(ks[0], (nInner, nIn), jnp.float32) / jnp.sqrt(nIn)
    g1 = 1.0 + 0.1 * jax.random.normal(ks[1], (nInner,), jnp.float32)
    bt1 = 0.1 * jax.random.normal(ks[2], (nInner,), jnp.float32)
    mu1 = 0.1 * jax.random.normal(ks[3], (nInner,), jnp.float32)
    var1 = jnp.abs(jax.random.normal(ks[4], (nInner,), jnp.float32)) + 0.5
    s1 = g1 / jnp.sqrt(var1 + eps)
    b1 = bt1 - mu1 * s1

    w3 = jax.random.normal(ks[5], (3, 3, nOut, nInner), jnp.float32) / jnp.sqrt(
        9.0 * nInner)
    g2 = 1.0 + 0.1 * jax.random.normal(ks[6], (nOut,), jnp.float32)
    bt2 = 0.1 * jax.random.normal(ks[7], (nOut,), jnp.float32)
    mu2 = 0.1 * jax.random.normal(ks[8], (nOut,), jnp.float32)
    var2 = jnp.abs(jax.random.normal(ks[9], (nOut,), jnp.float32)) + 0.5
    s2 = g2 / jnp.sqrt(var2 + eps)
    b2 = bt2 - mu2 * s2

    return (w1, s1.reshape(-1, 1), b1.reshape(-1, 1),
            w3, s2.reshape(-1, 1), b2.reshape(-1, 1))


def _reference(x_nchw, params):
    """Pure-JAX (XLA conv) reference for correctness check, NCHW end to end."""
    w1, s1, b1, w3, s2, b2 = params
    nInner, nIn = w1.shape
    nOut = w3.shape[2]
    dn = ("NCHW", "OIHW", "NCHW")
    h = lax.conv_general_dilated(x_nchw, w1.reshape(nInner, nIn, 1, 1),
                                 (1, 1), "SAME", dimension_numbers=dn)
    h = jnp.maximum(h * s1.reshape(1, nInner, 1, 1)
                    + b1.reshape(1, nInner, 1, 1), 0.0)
    w3_oihw = jnp.transpose(w3, (2, 3, 0, 1))            # (nOut, nInner, 3, 3)
    y = lax.conv_general_dilated(h, w3_oihw, (1, 1), "SAME",
                                 dimension_numbers=dn)
    y = jnp.maximum(y * s2.reshape(1, nOut, 1, 1)
                    + b2.reshape(1, nOut, 1, 1), 0.0)
    return y


if __name__ == "__main__":
    key = jax.random.PRNGKey(0)
    kx, kp = jax.random.split(key)

    # Module config (synthetic, deterministic):
    nIn, nOut, bottleneck, bnWidth = 4, 8, True, 2   # nInner = min(4, 16) = 4
    N, H, W = 2, 16, 16

    x = jax.random.normal(kx, (N, nIn, H, W), jnp.float32)
    params = make_params(kp, nIn, nOut, bottleneck, bnWidth)

    out = conv_bn_forward(x, params)
    out = jax.block_until_ready(out)

    ref = _reference(x, params)
    assert out.shape == (N, nOut, H, W), out.shape
    max_err = float(jnp.max(jnp.abs(out - ref)))
    assert jnp.allclose(out, ref, atol=5e-4, rtol=5e-4), max_err

    print("KERNEL_OK")
</pallas_src>

<mosaic_0001>
module attributes {stable_mosaic.version = 11 : i64} {
  func.func @_conv_bn_kernel(%arg0: i32, %arg1: memref<4x256xf32, #tpu.memory_space<vmem>>, %arg2: memref<8x4xf32, #tpu.memory_space<vmem>>, %arg3: memref<8x1xf32, #tpu.memory_space<vmem>>, %arg4: memref<8x72xf32, #tpu.memory_space<vmem>>, %arg5: memref<8x1xf32, #tpu.memory_space<vmem>>, %arg6: memref<9x256xf32, #tpu.memory_space<vmem>>, %arg7: memref<8x256xf32, #tpu.memory_space<vmem>>, %arg8: memref<72x256xf32, #tpu.memory_space<vmem>>) attributes {dimension_semantics = [#tpu.dimension_semantics<parallel>], iteration_bounds = array<i64: 2>, scalar_prefetch = 0 : i64, scratch_operands = 1 : i64, tpu.core_type = #tpu.core_type<tc>, window_params = [{transform_indices = @transform_0, window_bounds = array<i64: 4, 256>}, {pipeline_mode = #tpu.pipeline_mode<synchronous>, transform_indices = @transform_1, window_bounds = array<i64: 8, 4>}, {pipeline_mode = #tpu.pipeline_mode<synchronous>, transform_indices = @transform_2, window_bounds = array<i64: 8, 1>}, {pipeline_mode = #tpu.pipeline_mode<synchronous>, transform_indices = @transform_3, window_bounds = array<i64: 8, 72>}, {pipeline_mode = #tpu.pipeline_mode<synchronous>, transform_indices = @transform_4, window_bounds = array<i64: 8, 1>}, {pipeline_mode = #tpu.pipeline_mode<synchronous>, transform_indices = @transform_5, window_bounds = array<i64: 9, 256>}, {transform_indices = @transform_6, window_bounds = array<i64: 8, 256>}]} {
    %c0 = arith.constant 0 : index
    %c0_0 = arith.constant 0 : index
    %0 = vector.load %arg2[%c0, %c0_0] : memref<8x4xf32, #tpu.memory_space<vmem>>, vector<8x4xf32>
    %c0_1 = arith.constant 0 : index
    %c0_2 = arith.constant 0 : index
    %1 = vector.load %arg1[%c0_1, %c0_2] : memref<4x256xf32, #tpu.memory_space<vmem>>, vector<4x256xf32>
    %cst = arith.constant dense<0.000000e+00> : vector<8x256xf32>
    %2 = tpu.matmul %0, %1, %cst {dimension_numbers = #tpu.dot_dimension_numbers<[1], [0], [0], [1], [0, 0, 1, 1], [], []>} : vector<8x4xf32>, vector<4x256xf32>, vector<8x256xf32> -> vector<8x256xf32>
    %c0_3 = arith.constant 0 : index
    %c0_4 = arith.constant 0 : index
    %3 = vector.load %arg3[%c0_3, %c0_4] : memref<8x1xf32, #tpu.memory_space<vmem>>, vector<8x1xf32>
    %4 = vector.broadcast %3 : vector<8x1xf32> to vector<8x256xf32>
    %5 = arith.addf %2, %4 : vector<8x256xf32>
    %cst_5 = arith.constant 0.000000e+00 : f32
    %6 = vector.broadcast %cst_5 : f32 to vector<8x256xf32>
    %7 = arith.maximumf %5, %6 : vector<8x256xf32>
    %c17_i32 = arith.constant 17 : i32
    %8 = tpu.dynamic_rotate %7 by %c17_i32 dim 1 : vector<8x256xf32>, i32 -> vector<8x256xf32>
    %c0_6 = arith.constant 0 : index
    %c0_7 = arith.constant 0 : index
    %9 = vector.load %arg6[%c0_6, %c0_7] : memref<9x256xf32, #tpu.memory_space<vmem>>, vector<1x256xf32>
    %10 = vector.broadcast %9 : vector<1x256xf32> to vector<8x256xf32>
    %11 = arith.mulf %8, %10 : vector<8x256xf32>
    %c0_8 = arith.constant 0 : index
    %c0_9 = arith.constant 0 : index
    %12 = vector.load %arg8[%c0_8, %c0_9] : memref<72x256xf32, #tpu.memory_space<vmem>>, vector<8x256xf32>
    tpu.vector_store %arg8[%c0_8, %c0_9], %11 {strides = array<i32>} : memref<72x256xf32, #tpu.memory_space<vmem>>, vector<8x256xf32>,
    %c16_i32 = arith.constant 16 : i32
    %13 = tpu.dynamic_rotate %7 by %c16_i32 dim 1 : vector<8x256xf32>, i32 -> vector<8x256xf32>
    %c1 = arith.constant 1 : index
    %c0_10 = arith.constant 0 : index
    %14 = vector.load %arg6[%c1, %c0_10] : memref<9x256xf32, #tpu.memory_space<vmem>>, vector<1x256xf32>
    %15 = vector.broadcast %14 : vector<1x256xf32> to vector<8x256xf32>
    %16 = arith.mulf %13, %15 : vector<8x256xf32>
    %c8 = arith.constant 8 : index
    %c0_11 = arith.constant 0 : index
    %17 = vector.load %arg8[%c8, %c0_11] : memref<72x256xf32, #tpu.memory_space<vmem>>, vector<8x256xf32>
    tpu.vector_store %arg8[%c8, %c0_11], %16 {strides = array<i32>} : memref<72x256xf32, #tpu.memory_space<vmem>>, vector<8x256xf32>,
    %c15_i32 = arith.constant 15 : i32
    %18 = tpu.dynamic_rotate %7 by %c15_i32 dim 1 : vector<8x256xf32>, i32 -> vector<8x256xf32>
    %c2 = arith.constant 2 : index
    %c0_12 = arith.constant 0 : index
    %19 = vector.load %arg6[%c2, %c0_12] : memref<9x256xf32, #tpu.memory_space<vmem>>, vector<1x256xf32>
    %20 = vector.broadcast %19 : vector<1x256xf32> to vector<8x256xf32>
    %21 = arith.mulf %18, %20 : vector<8x256xf32>
    %c16 = arith.constant 16 : index
    %c0_13 = arith.constant 0 : index
    %22 = vector.load %arg8[%c16, %c0_13] : memref<72x256xf32, #tpu.memory_space<vmem>>, vector<8x256xf32>
    tpu.vector_store %arg8[%c16, %c0_13], %21 {strides = array<i32>} : memref<72x256xf32, #tpu.memory_space<vmem>>, vector<8x256xf32>,
    %c1_i32 = arith.constant 1 : i32
    %23 = tpu.dynamic_rotate %7 by %c1_i32 dim 1 : vector<8x256xf32>, i32 -> vector<8x256xf32>
    %c3 = arith.constant 3 : index
    %c0_14 = arith.constant 0 : index
    %24 = vector.load %arg6[%c3, %c0_14] : memref<9x256xf32, #tpu.memory_space<vmem>>, vector<1x256xf32>
    %25 = vector.broadcast %24 : vector<1x256xf32> to vector<8x256xf32>
    %26 = arith.mulf %23, %25 : vector<8x256xf32>
    %c24 = arith.constant 24 : index
    %c0_15 = arith.constant 0 : index
    %27 = vector.load %arg8[%c24, %c0_15] : memref<72x256xf32, #tpu.memory_space<vmem>>, vector<8x256xf32>
    tpu.vector_store %arg8[%c24, %c0_15], %26 {strides = array<i32>} : memref<72x256xf32, #tpu.memory_space<vmem>>, vector<8x256xf32>,
    %c32 = arith.constant 32 : index
    %c0_16 = arith.constant 0 : index
    %28 = vector.load %arg8[%c32, %c0_16] : memref<72x256xf32, #tpu.memory_space<vmem>>, vector<8x256xf32>
    tpu.vector_store %arg8[%c32, %c0_16], %7 {strides = array<i32>} : memref<72x256xf32, #tpu.memory_space<vmem>>, vector<8x256xf32>,
    %c255_i32 = arith.constant 255 : i32
    %29 = tpu.dynamic_rotate %7 by %c255_i32 dim 1 : vector<8x256xf32>, i32 -> vector<8x256xf32>
    %c5 = arith.constant 5 : index
    %c0_17 = arith.constant 0 : index
    %30 = vector.load %arg6[%c5, %c0_17] : memref<9x256xf32, #tpu.memory_space<vmem>>, vector<1x256xf32>
    %31 = vector.broadcast %30 : vector<1x256xf32> to vector<8x256xf32>
    %32 = arith.mulf %29, %31 : vector<8x256xf32>
    %c40 = arith.constant 40 : index
    %c0_18 = arith.constant 0 : index
    %33 = vector.load %arg8[%c40, %c0_18] : memref<72x256xf32, #tpu.memory_space<vmem>>, vector<8x256xf32>
    tpu.vector_store %arg8[%c40, %c0_18], %32 {strides = array<i32>} : memref<72x256xf32, #tpu.memory_space<vmem>>, vector<8x256xf32>,
    %c241_i32 = arith.constant 241 : i32
    %34 = tpu.dynamic_rotate %7 by %c241_i32 dim 1 : vector<8x256xf32>, i32 -> vector<8x256xf32>
    %c6 = arith.constant 6 : index
    %c0_19 = arith.constant 0 : index
    %35 = vector.load %arg6[%c6, %c0_19] : memref<9x256xf32, #tpu.memory_space<vmem>>, vector<1x256xf32>
    %36 = vector.broadcast %35 : vector<1x256xf32> to vector<8x256xf32>
    %37 = arith.mulf %34, %36 : vector<8x256xf32>
    %c48 = arith.constant 48 : index
    %c0_20 = arith.constant 0 : index
    %38 = vector.load %arg8[%c48, %c0_20] : memref<72x256xf32, #tpu.memory_space<vmem>>, vector<8x256xf32>
    tpu.vector_store %arg8[%c48, %c0_20], %37 {strides = array<i32>} : memref<72x256xf32, #tpu.memory_space<vmem>>, vector<8x256xf32>,
    %c240_i32 = arith.constant 240 : i32
    %39 = tpu.dynamic_rotate %7 by %c240_i32 dim 1 : vector<8x256xf32>, i32 -> vector<8x256xf32>
    %c7 = arith.constant 7 : index
    %c0_21 = arith.constant 0 : index
    %40 = vector.load %arg6[%c7, %c0_21] : memref<9x256xf32, #tpu.memory_space<vmem>>, vector<1x256xf32>
    %41 = vector.broadcast %40 : vector<1x256xf32> to vector<8x256xf32>
    %42 = arith.mulf %39, %41 : vector<8x256xf32>
    %c56 = arith.constant 56 : index
    %c0_22 = arith.constant 0 : index
    %43 = vector.load %arg8[%c56, %c0_22] : memref<72x256xf32, #tpu.memory_space<vmem>>, vector<8x256xf32>
    tpu.vector_store %arg8[%c56, %c0_22], %42 {strides = array<i32>} : memref<72x256xf32, #tpu.memory_space<vmem>>, vector<8x256xf32>,
    %c239_i32 = arith.constant 239 : i32
    %44 = tpu.dynamic_rotate %7 by %c239_i32 dim 1 : vector<8x256xf32>, i32 -> vector<8x256xf32>
    %c8_23 = arith.constant 8 : index
    %c0_24 = arith.constant 0 : index
    %45 = vector.load %arg6[%c8_23, %c0_24] : memref<9x256xf32, #tpu.memory_space<vmem>>, vector<1x256xf32>
    %46 = vector.broadcast %45 : vector<1x256xf32> to vector<8x256xf32>
    %47 = arith.mulf %44, %46 : vector<8x256xf32>
    %c64 = arith.constant 64 : index
    %c0_25 = arith.constant 0 : index
    %48 = vector.load %arg8[%c64, %c0_25] : memref<72x256xf32, #tpu.memory_space<vmem>>, vector<8x256xf32>
    tpu.vector_store %arg8[%c64, %c0_25], %47 {strides = array<i32>} : memref<72x256xf32, #tpu.memory_space<vmem>>, vector<8x256xf32>,
    %c0_26 = arith.constant 0 : index
    %c0_27 = arith.constant 0 : index
    %49 = vector.load %arg4[%c0_26, %c0_27] : memref<8x72xf32, #tpu.memory_space<vmem>>, vector<8x72xf32>
    %c0_28 = arith.constant 0 : index
    %c0_29 = arith.constant 0 : index
    %50 = vector.load %arg8[%c0_28, %c0_29] : memref<72x256xf32, #tpu.memory_space<vmem>>, vector<72x256xf32>
    %cst_30 = arith.constant dense<0.000000e+00> : vector<8x256xf32>
    %51 = tpu.matmul %49, %50, %cst_30 {dimension_numbers = #tpu.dot_dimension_numbers<[1], [0], [0], [1], [0, 0, 1, 1], [], []>} : vector<8x72xf32>, vector<72x256xf32>, vector<8x256xf32> -> vector<8x256xf32>
    %c0_31 = arith.constant 0 : index
    %c0_32 = arith.constant 0 : index
    %52 = vector.load %arg5[%c0_31, %c0_32] : memref<8x1xf32, #tpu.memory_space<vmem>>, vector<8x1xf32>
    %53 = vector.broadcast %52 : vector<8x1xf32> to vector<8x256xf32>
    %54 = arith.addf %51, %53 : vector<8x256xf32>
    %cst_33 = arith.constant 0.000000e+00 : f32
    %55 = vector.broadcast %cst_33 : f32 to vector<8x256xf32>
    %56 = arith.maximumf %54, %55 : vector<8x256xf32>
    %c0_34 = arith.constant 0 : index
    %c0_35 = arith.constant 0 : index
    %57 = vector.load %arg7[%c0_34, %c0_35] : memref<8x256xf32, #tpu.memory_space<vmem>>, vector<8x256xf32>
    tpu.vector_store %arg7[%c0_34, %c0_35], %56 {strides = array<i32>} : memref<8x256xf32, #tpu.memory_space<vmem>>, vector<8x256xf32>,
    return
  }
  func.func @transform_0(%arg0: i32) -> (i32, i32) {
    %c0_i32 = arith.constant 0 : i32
    %c0_i32_0 = arith.constant 0 : i32
    return %c0_i32, %arg0 : i32, i32
  }
  func.func @transform_1(%arg0: i32) -> (i32, i32) {
    %c0_i32 = arith.constant 0 : i32
    %c0_i32_0 = arith.constant 0 : i32
    %c0_i32_1 = arith.constant 0 : i32
    return %c0_i32, %c0_i32_0 : i32, i32
  }
  func.func @transform_2(%arg0: i32) -> (i32, i32) {
    %c0_i32 = arith.constant 0 : i32
    %c0_i32_0 = arith.constant 0 : i32
    %c0_i32_1 = arith.constant 0 : i32
    return %c0_i32, %c0_i32_0 : i32, i32
  }
  func.func @transform_3(%arg0: i32) -> (i32, i32) {
    %c0_i32 = arith.constant 0 : i32
    %c0_i32_0 = arith.constant 0 : i32
    %c0_i32_1 = arith.constant 0 : i32
    return %c0_i32, %c0_i32_0 : i32, i32
  }
  func.func @transform_4(%arg0: i32) -> (i32, i32) {
    %c0_i32 = arith.constant 0 : i32
    %c0_i32_0 = arith.constant 0 : i32
    %c0_i32_1 = arith.constant 0 : i32
    return %c0_i32, %c0_i32_0 : i32, i32
  }
  func.func @transform_5(%arg0: i32) -> (i32, i32) {
    %c0_i32 = arith.constant 0 : i32
    %c0_i32_0 = arith.constant 0 : i32
    %c0_i32_1 = arith.constant 0 : i32
    return %c0_i32, %c0_i32_0 : i32, i32
  }
  func.func @transform_6(%arg0: i32) -> (i32, i32) {
    %c0_i32 = arith.constant 0 : i32
    %c0_i32_0 = arith.constant 0 : i32
    return %c0_i32, %arg0 : i32, i32
  }
}

</mosaic_0001>

<bundles_post_ra>
// kernel: tpu_custom_call.1
= control target key start
LH: loop header
LB: loop body
LE: loop exit
PB: predicated region body
PF: predicated region fallthrough
CT: control target
= control target key end

     0   :  { %11 = vsyncpa [#allocation4], 0  ;;  %s1230_s0 = inlined_call_operand.vmem [shape: f32[4,512], index: 0, kind: input, shape index: {}]   ;;  %s1231_s1 = inlined_call_operand.vmem [shape: f32[8,4], index: 1, kind: input, shape index: {}]   ;;  %s1232_s2 = inlined_call_operand.vmem [shape: f32[8,1], index: 2, kind: input, shape index: {}]   ;;  %s1233_s3 = inlined_call_operand.hbm [shape: f32[8,72], index: 3, kind: input, shape index: {}]   ;;  %s1234_s4 = inlined_call_operand.vmem [shape: f32[8,1], index: 4, kind: input, shape index: {}]   ;;  %s1235_s5 = inlined_call_operand.vmem [shape: f32[9,256], index: 5, kind: input, shape index: {}]   ;;  %s1236_s6 = inlined_call_operand.hbm [shape: f32[8,512], index: 6, kind: output, shape index: {}]  }
   0x1   :  { %12 = vsyncpa [#allocation5], 0 }
   0x2   :  { %14 = vsyncpa [#allocation5 + $0x1], 0  ;;  %s991_s21 = smov 0   ;;  %s993_s22 = smov 0  }
   0x3   :  { %s995_s23 = smov 0   ;;  %s997_s24 = smov 0  }
   0x4 LB: > { %s1012_s25 = sadd.s32 4294967295, %s942_s24   ;;  %s743_s26 = sadd.s32 4294967294, %s942_s24   ;;  %s942_s24 = sphi %s997_s24, %s1252_s24   ;;  %s938_s23 = sphi %s995_s23, %s1251_s23   ;;  %s934_s22 = sphi %s993_s22, %s1250_s22   ;;  %s930_s21 = sphi %s991_s21, %s1249_s21  }
   0x5   : > { %s1016_s27 = sadd.s32 1, %s942_s24   ;;  %s158_s28 = sadd.s32 1, %s938_s23 }
   0x6   : > { %s155_s29 = ssub.s32 %s942_s24, %s1016_s27  ;;  %p168_p0 = scmp.ne.s32.totalorder %s938_s23, %s934_s22 }
   0x7   : > { %p156_p1 = scmp.eq.s32.totalorder %s155_s29, 0  ;;  %p169_p2 = scmp.eq.s32.totalorder %s1012_s25, 1 }
   0x8   : > { %p174_p3 = scmp.ne.s32.totalorder %s934_s22, %s930_s21  ;;  %p175_p4 = scmp.eq.s32.totalorder %s743_s26, 1 }
   0x9   : > { %s1027_s30 = scalar_select %p156_p1, %s938_s23, %s158_s28  }
   0xa   : > { %p1029_p5 = por %p169_p2, %p168_p0  ;;  %p1033_p6 = por %p175_p4, %p174_p3 }
   0xb   : > { %p744_p7 = scmp.ge.s32.totalorder %s942_s24, 1  ;;  %p182_p8 = scmp.lt.s32.totalorder %s942_s24, 3 }
   0xc   : > { %s1240_s7 = scalar_select %p1029_p5, 1, 0 }
   0xd   : > { %s1241_s8 = scalar_select %p1033_p6, 1, 0 }
   0xe   : > { %p1237_p9 = scmp.eq.s32.totalorder %s1012_s25, 0  ;;  %p1040_p10 = pnand %p744_p7, %p182_p8 }
   0xf   : > { %s944_s10 = smov [#allocation3]   ;;  %s848_s15 = scalar_lea.hbm %s1233_s3, 128 }
  0x10   : > { %s1242_s9 = scalar_select %p1040_p10, 1, 0 }
  0x11   : > { %s201_s11 = sshll.u32 %s944_s10, 4  ;;  %p791_p11 = pneg %p1040_p10  ;;  %s202_s11 = int_to_ptr.vmem [resolvable:$true] %s201_s11 }
  0x12   : > { %p849_p13 = scmp.ne.s32.totalorder %s1233_s3, %s848_s15  ;;  %p855_p3 = scmp.lt.u32.totalorder %s848_s15, %s1233_s3 }
  0x13   : > { %p1048_p12 = pnand %p1237_p9, %p791_p11 }
  0x15   : > { %p850_p0 = pneg %p1048_p12 }
  0x17   : > { %p851_p1 = pnand %p850_p0, %p849_p13 }
  0x19   : > { %p852_p2 = pneg %p851_p1 }
  0x1b   : > { %p857_p4 = pnand %p855_p3, %p852_p2 }
  0x1d   : > { %860 = shalt.err (!%p857_p4)
}
  0x1e   : > { %s861_s20 = scalar_lea.vmem %s202_s11, 128  ;;  %p869_p9 = scmp.lt.s32.totalorder %s202_s11, %s202_s11 }
  0x1f   : > { %p862_p7 = scmp.ne.s32.totalorder %s202_s11, %s861_s20  ;;  %p870_p6 = scmp.lt.s32.totalorder %s861_s20, %s861_s20 }
  0x21   : > { %p864_p8 = pnand %p862_p7, %p850_p0  ;;  %p871_p5 = por %p870_p6, %p869_p9 }
  0x23   : > { %p865_p11 = pneg %p864_p8 }
  0x25   : > { %p872_p10 = pnand %p871_p5, %p865_p11 }
  0x27   : > { %875 = shalt.err (!%p872_p10)
}
  0x28   : > { %794 = dma.hbm_to_vmem [thread:$0]  (!%p1048_p12), %s1233_s3, 128, %s202_s11, [#allocation4]  }
  0x29   : > { %p1244_p13 = scmp.ne.s32.totalorder %s1242_s9, 0 }
  0x2a   : > { %p1245_p1 = scmp.eq.s32.totalorder (!%p1244_p13), %s1012_s25, 0 }
  0x2b   : > { %229 = sbr.rel (%p1244_p13) target bundleno = 659 (0x293), region = 44 }
  0x32   : > { %921 = dma.done.wait (%p1245_p1), [#allocation4], 128   ;;  %p1246_p0 = pmov %p1245_p1 }
  0x33   : > { %s750_s29 = sshll.u32 %s1012_s25, 1  ;;  %v945_v0 = vmov 0.0   ;;  %v946_v1 = vmov 0   ;;  %vm280_vm0 = vcmask 1043456   ;;  %v268_v3 = vld [vmem:[%s1232_s2] sm:$0xff]  ;;  %vm276_vm1 = vcmask 31744  }
  0x34   : > { %923 = vsyncadd (%p1246_p0), [#allocation4], 4294967168  ;;  %p260_p6 = scmp.lt.s32.totalorder %s750_s29, 3  ;;  %349 = vmatprep.mubr.f32.mxu0 %v945_v0  ;;  %646 = vmatprep.mubr.f32.mxu1 %v945_v0  ;;  %v266_v5 = vld [vmem:[%s1231_s1] sm:$0xff]  ;;  %s947_s17 = smov 16   ;;  %v362_v14 = vlaneseq  ;;  %vm578_vm10 = vcmask 588800  }
  0x35   : > { %845 = vset.pattern.permute.xlu0 %v946_v1  ;;  %846 = vset.pattern.permute.xlu1 %v946_v1  ;;  %s948_s18 = smov 17   ;;  %s949_s19 = smov 15   ;;  %v572_v13 = vld [vmem:[%s1234_s4] sm:$0xff] }
  0x36   : > { %s1254_s29 = smov (!%p260_p6, %s750_s29), 3  ;;  %271 = vperm.xlu0 %845, %v268_v3   ;;  %s950_s20 = smov 1   ;;  %v370_v17 = vshrl.u32 %v362_v14, 7  ;;  %v1107_v18 = vand.u32 127, %v362_v14 }
  0x37   : > { %s751_s10 = sshll.u32 %s1254_s29, 2  ;;  %s951_s26 = smov 127   ;;  %v755_v23 = vld [vmem:[%s1235_s5 + $0x1] ss:$8 sm:$0x3] }
  0x38   : > { %s263_s12 = scalar_lea.vmem %s1230_s0, %s751_s10  ;;  %s952_s28 = smov 113   ;;  %v1109_v20 = vsub.s32 0, %v370_v17  ;;  %v1111_v22 = vsub.s32 1, %v370_v17  ;;  %vm387_vm2 = vcmp.lt.s32.totalorder %v1107_v18, 16  ;;  %vm411_vm3 = vcmp.lt.s32.totalorder %v1107_v18, 15 }
  0x39   : > { %v267_v2 = vld [vmem:[%s263_s12] sm:$0xff]  ;;  %s953_s29 = smov 112   ;;  %s954_s10 = smov 111   ;;  %vm364_vm4 = vcmp.lt.s32.totalorder %v1107_v18, 17  ;;  %vm435_vm5 = vcmp.lt.s32.totalorder %v1107_v18, 1  ;;  %vm461_vm6 = vcmp.lt.s32.totalorder %v1107_v18, 127 }
  0x3a   : > { %v275_v4 = vcombine.high %v267_v2, %v267_v2  ;;  %v367_v24 = vld [vmem:[%s1235_s5] ss:$8 sm:$0x3]  ;;  %v757_v25 = vld [vmem:[%s1235_s5 + $0x3] ss:$8 sm:$0x3]  ;;  %v396_v26 = vrot.slane %v755_v23, %v1109_v20  ;;  %v400_v30 = vrot.slane %v755_v23, %v1111_v22 }
  0x3b   : > { %v756_v28 = vld [vmem:[%s1235_s5 + $0x2] ss:$8 sm:$0x3]  ;;  %v758_v33 = vld [vmem:[%s1235_s5 + $0x5] ss:$8 sm:$0x3]  ;;  %v372_v34 = vrot.slane %v367_v24, %v1109_v20  ;;  %v448_v35 = vrot.slane %v757_v25, %v1111_v22  ;;  %v376_v36 = vrot.slane %v367_v24, %v1111_v22  ;;  %v444_v38 = vrot.slane %v757_v25, %v1109_v20 }
  0x3c   : > { %752 = vmatprep.subr.msk.mxu0 %vm280_vm0, %v275_v4  ;;  %v424_v37 = vrot.slane %v756_v28, %v1111_v22  ;;  %v474_v42 = vrot.slane %v758_v33, %v1111_v22  ;;  %v420_v52 = vrot.slane %v756_v28, %v1109_v20  ;;  %v470_v60 = vrot.slane %v758_v33, %v1109_v20  ;;  %v759_v1 = vld [vmem:[%s1235_s5 + $0x6] ss:$8 sm:$0x3]  ;;  %v760_v3 = vld [vmem:[%s1235_s5 + $0x7] ss:$8 sm:$0x3] }
  0x3d   : > { %753 = vmatpush1.msk.msra.mxu0 %vm280_vm0, %v267_v2  ;;  %vm485_vm7 = vcmp.lt.s32.totalorder %v1107_v18, 113  ;;  %vm509_vm8 = vcmp.lt.s32.totalorder %v1107_v18, 112  ;;  %v522_v14 = vrot.slane %v760_v3, %v1111_v22  ;;  %vm533_vm9 = vcmp.lt.s32.totalorder %v1107_v18, 111  ;;  %s256_s13 = sand.u32 1, %s934_s22   ;;  %s768_s15 = sshll.u32 %s1012_s25, 8 }
  0x3e   : > { %754 = vmatmul.mubr.msk.f32.vlgmr.msra.gmra.mrb[0].mxu0 %vm276_vm1, %v266_v5  ;;  %s749_s14 = sshll.u32 %s256_s13, 4  ;;  %p1247_p9 = scmp.ne.s32.totalorder %s1240_s7, 0 }
  0x3f   : > { %s258_s16 = scalar_lea.vmem [#allocation6], %s749_s14  ;;  %s955_s25 = smov [#allocation6]  }
  0xb5   : > { %v272_v6 = vpop.permute.xlu0 %271 }
 0x111   : > { %v351_v7 = vpop.f32.mrb[0].mxu0 }
 0x112   : > { %v352_v8 = vadd.f32 %v351_v7, %v272_v6  ;;  %v353_v9 = vpop.f32.mrb[1].mxu0  ;;  %v494_v7 = vrot.slane %v759_v1, %v1109_v20 }
 0x113   : > { %v354_v11 = vadd.f32 %v353_v9, %v272_v6 }
 0x114   : > { %v1084_v10 = vmax.f32 %v352_v8, 0.0  ;;  %v498_v8 = vrot.slane %v759_v1, %v1111_v22 }
 0x115   : > { %v1088_v12 = vmax.f32 %v354_v11, 0.0 }
 0x116   : > { %383 = vrot.lane.b32.xlu1 %v1084_v10, %s947_s17  ;;  %358 = vrot.lane.b32.xlu0 %v1084_v10, %s948_s18 }
 0x11a   : > { %407 = vrot.lane.b32.xlu1 %v1084_v10, %s949_s19  ;;  %385 = vrot.lane.b32.xlu0 %v1088_v12, %s947_s17  ;;  %s672_s17 = sshll.u32 %s258_s16, 4  ;;  %s1190_s17 = int_to_ptr.vmem [resolvable:$true] %s672_s17 }
 0x11e   : > { %431 = vrot.lane.b32.xlu1 %v1084_v10, %s950_s20  ;;  %409 = vrot.lane.b32.xlu0 %v1088_v12, %s949_s19 }
 0x122   : > { %360 = vrot.lane.b32.xlu1 %v1088_v12, %s948_s18  ;;  %433 = vrot.lane.b32.xlu0 %v1088_v12, %s950_s20  ;;  %s1188_s20 = scalar_lea.hbm %s1236_s6, %s768_s15 }
 0x126   : > { %457 = vrot.lane.b32.xlu1 %v1084_v10, %s951_s26  ;;  %459 = vrot.lane.b32.xlu0 %v1088_v12, %s951_s26  ;;  %s658_s26 = scalar_lea.sflag [#allocation5], %s256_s13 }
 0x12a   : > { %481 = vrot.lane.b32.xlu1 %v1084_v10, %s952_s28  ;;  %483 = vrot.lane.b32.xlu0 %v1088_v12, %s952_s28  ;;  %s876_s28 = scalar_lea.vmem %s1190_s17, 256 }
 0x12b   : > { %p877_p5 = scmp.ne.s32.totalorder %s1190_s17, %s876_s28 }
 0x12d   : > { %p878_p10 = pnand %p877_p5, %p1247_p9 }
 0x12e   : > { %505 = vrot.lane.b32.xlu1 %v1084_v10, %s953_s29  ;;  %507 = vrot.lane.b32.xlu0 %v1088_v12, %s953_s29  ;;  %s880_s29 = sshll.u32 %s955_s25, 4  ;;  %s881_s29 = int_to_ptr.vmem [resolvable:$false] %s880_s29 }
 0x12f   : > { %p879_p12 = pneg %p878_p10  ;;  %p883_p2 = scmp.lt.s32.totalorder %s1190_s17, %s881_s29 }
 0x132   : > { %529 = vrot.lane.b32.xlu1 %v1084_v10, %s954_s10  ;;  %531 = vrot.lane.b32.xlu0 %v1088_v12, %s954_s10  ;;  %s882_s10 = scalar_lea.vmem %s881_s29, 512 }
 0x133   : > { %p884_p3 = scmp.lt.s32.totalorder %s882_s10, %s876_s28 }
 0x135   : > { %p885_p4 = por %p884_p3, %p883_p2 }
 0x136   : > { %575 = vperm.xlu1 %846, %v572_v13   ;;  %v518_v13 = vrot.slane %v760_v3, %v1109_v20 }
 0x137   : > { %p886_p7 = pnand %p885_p4, %p879_p12 }
 0x188   : > { %v384_v15 = vpop.permute.xlu1 %383  ;;  %v359_v16 = vpop.permute.xlu0 %358 }
 0x18c   : > { %v408_v19 = vpop.permute.xlu1 %407  ;;  %v386_v21 = vpop.permute.xlu0 %385 }
 0x18d   : > { %v388_v31 = vsel %vm387_vm2, %v384_v15, %v386_v21  ;;  %v389_v32 = vsel %vm387_vm2, %v386_v21, %v384_v15  ;;  %v761_v15 = vld [vmem:[%s1235_s5 + $0x10] ss:$8 sm:$0x3] }
 0x18e   : > { %v403_v39 = vmul.f32 %v396_v26, %v389_v32  ;;  %v404_v43 = vmul.f32 %v400_v30, %v388_v31  ;;  %v546_v25 = vrot.slane %v761_v15, %v1111_v22 }
 0x190   : > { %v432_v27 = vpop.permute.xlu1 %431  ;;  %v410_v29 = vpop.permute.xlu0 %409 }
 0x191   : > { %v412_v44 = vsel %vm411_vm3, %v408_v19, %v410_v29  ;;  %v413_v53 = vsel %vm411_vm3, %v410_v29, %v408_v19 }
 0x192   : > { %v428_v54 = vmul.f32 %v424_v37, %v412_v44  ;;  %v427_v2 = vmul.f32 %v420_v52, %v413_v53  ;;  %v553_v37 = vld [vmem:[#allocation3] sm:$0xff] }
 0x194   : > { %v361_v40 = vpop.permute.xlu1 %360  ;;  %v434_v41 = vpop.permute.xlu0 %433 }
 0x195   : > { %v365_v45 = vsel %vm364_vm4, %v359_v16, %v361_v40  ;;  %v366_v46 = vsel %vm364_vm4, %v361_v40, %v359_v16  ;;  %v436_v47 = vsel %vm435_vm5, %v432_v27, %v434_v41  ;;  %v437_v49 = vsel %vm435_vm5, %v434_v41, %v432_v27 }
 0x196   : > { %v379_v48 = vmul.f32 %v372_v34, %v366_v46  ;;  %v452_v50 = vmul.f32 %v448_v35, %v436_v47  ;;  %v380_v51 = vmul.f32 %v376_v36, %v365_v45  ;;  %v451_v59 = vmul.f32 %v444_v38, %v437_v49 }
 0x197   : > { %v542_v34 = vrot.slane %v761_v15, %v1109_v20 }
 0x198   : > { %v458_v55 = vpop.permute.xlu1 %457  ;;  %v460_v56 = vpop.permute.xlu0 %459  ;;  %v769_v57 = vpack.c.bf16 %v404_v43, %v380_v51  ;;  %v771_v58 = vpack.c.bf16 %v403_v39, %v379_v48  ;;  %v773_v0 = vpack.c.bf16 %v452_v50, %v428_v54  ;;  %v775_v9 = vpack.c.bf16 %v451_v59, %v427_v2 }
 0x199   : > { %v463_v61 = vsel %vm461_vm6, %v460_v56, %v458_v55  ;;  %v462_v62 = vsel %vm461_vm6, %v458_v55, %v460_v56 }
 0x19a   : > { %v478_v63 = vmul.f32 %v474_v42, %v463_v61  ;;  %770 = vmatprep.subr.bf16.mxu1 %v769_v57  ;;  %v477_v6 = vmul.f32 %v470_v60, %v462_v62 }
 0x19b   : > { %772 = vmatpush1.bf16.msra.mxu1 %v771_v58 }
 0x19c   : > { %v482_v4 = vpop.permute.xlu1 %481  ;;  %774 = vmatprep.subr.bf16.mxu1 %v773_v0  ;;  %v484_v5 = vpop.permute.xlu0 %483  ;;  %v777_v11 = vpack.c.bf16 %v478_v63, %v1088_v12  ;;  %v779_v24 = vpack.c.bf16 %v477_v6, %v1084_v10 }
 0x19d   : > { %v486_v16 = vsel %vm485_vm7, %v482_v4, %v484_v5  ;;  %v487_v17 = vsel %vm485_vm7, %v484_v5, %v482_v4 }
 0x19e   : > { %v501_v26 = vmul.f32 %v494_v7, %v486_v16  ;;  %v502_v27 = vmul.f32 %v498_v8, %v487_v17 }
 0x19f   : > { %776 = vmatpush1.bf16.msra.mxu1 %v775_v9 }
 0x1a0   : > { %v506_v19 = vpop.permute.xlu1 %505  ;;  %778 = vmatprep.subr.bf16.mxu1 %v777_v11  ;;  %v508_v21 = vpop.permute.xlu0 %507 }
 0x1a1   : > { %v510_v23 = vsel %vm509_vm8, %v506_v19, %v508_v21  ;;  %v511_v12 = vsel %vm509_vm8, %v508_v21, %v506_v19 }
 0x1a2   : > { %v525_v28 = vmul.f32 %v518_v13, %v510_v23  ;;  %v526_v29 = vmul.f32 %v522_v14, %v511_v12 }
 0x1a3   : > { %780 = vmatpush1.bf16.msra.mxu1 %v779_v24 }
 0x1a4   : > { %v530_v30 = vpop.permute.xlu1 %529  ;;  %v532_v31 = vpop.permute.xlu0 %531  ;;  %v781_v32 = vpack.c.bf16 %v526_v29, %v502_v27  ;;  %v783_v33 = vpack.c.bf16 %v525_v28, %v501_v26 }
 0x1a5   : > { %v535_v35 = vsel %vm533_vm9, %v532_v31, %v530_v30  ;;  %v534_v10 = vsel %vm533_vm9, %v530_v30, %v532_v31 }
 0x1a6   : > { %v550_v22 = vmul.f32 %v546_v25, %v535_v35  ;;  %782 = vmatprep.subr.bf16.mxu1 %v781_v32  ;;  %v549_v36 = vmul.f32 %v542_v34, %v534_v10 }
 0x1a7   : > { %784 = vmatpush1.bf16.msra.mxu1 %v783_v33 }
 0x1a8   : > { %598 = vmatprep.subr.mxu1 %v550_v22 }
 0x1ab   : > { %599 = vmatpush1.msra.mxu1 %v549_v36 }
 0x1ac   : > { %762 = vmatmul.mubr.msk.f32.vlgmr.msra.gmra.mrb[0].mxu1 %vm578_vm10, %v553_v37 }
 0x1b5   : > { %v576_v38 = vpop.permute.xlu1 %575 }
 0x27f   : > { %v648_v20 = vpop.f32.mrb[0].mxu1 }
 0x280   : > { %v649_v39 = vadd.f32 %v648_v20, %v576_v38  ;;  %v650_v40 = vpop.f32.mrb[1].mxu1 }
 0x281   : > { %v651_v18 = vadd.f32 %v650_v40, %v576_v38 }
 0x282   : > { %v653_v41 = vmax.f32 %v649_v39, 0.0 }
 0x283   : > { %v654_v42 = vmax.f32 %v651_v18, 0.0 }
 0x284   : > { %655 = vst [vmem:[%s258_s16] sm:$0xff] %v653_v41 }
 0x285   : > { %656 = vst [vmem:[%s258_s16 + $0x8] sm:$0xff] %v654_v42 }
 0x286   : > { %889 = shalt.err (!%p886_p7)
}
 0x287   : > { %s890_s11 = scalar_lea.hbm %s1188_s20, 256  ;;  %s894_s13 = scalar_lea.hbm %s1236_s6, 512 }
 0x288   : > { %p891_p8 = scmp.ne.s32.totalorder %s1188_s20, %s890_s11  ;;  %p895_p1 = scmp.lt.u32.totalorder %s1188_s20, %s1236_s6 }
 0x289   : > { %p896_p0 = scmp.lt.u32.totalorder %s894_s13, %s890_s11  ;;  %p898_p5 = scmp.lt.u32.totalorder %s890_s11, %s1188_s20 }
 0x28a   : > { %p892_p11 = pnand %p891_p8, %p1247_p9 }
 0x28b   : > { %p897_p6 = por %p896_p0, %p895_p1 }
 0x28c   : > { %p893_p13 = pneg %p892_p11 }
 0x28d   : > { %p899_p10 = por %p898_p5, %p897_p6 }
 0x28f   : > { %p900_p12 = pnand %p899_p10, %p893_p13 }
 0x291   : > { %903 = shalt.err (!%p900_p12)
}
 0x292   : > { %789 = dma.vmem_to_hbm [thread:$0]  (%p1247_p9), %s1190_s17, 256, %s1188_s20, %s658_s26  }
 0x293 PF: > { %p801_p2 = scmp.ge.s32.totalorder %s942_s24, 2  ;;  %s684_s16 = sand.u32 1, %s930_s21  }
 0x294   : > { %p1248_p3 = scmp.ne.s32.totalorder %s1241_s8, 0  ;;  %s685_s18 = scalar_lea.sflag [#allocation5], %s684_s16 }
 0x296   : > { %p796_p4 = pnand %p801_p2, %p1248_p3 }
 0x298   : > { %925 = dma.done.wait (!%p796_p4), %s685_s18, 256  }
 0x299   : > { %927 = vsyncadd (!%p796_p4), %s685_s18, 4294967040  ;;  %p17_p7 = scmp.ge.s32.totalorder %s1016_s27, 4   ;;  %s1249_s21 = smov %s934_s22 }
 0x29a   : > { %s1250_s22 = smov %s938_s23  ;;  %s1251_s23 = smov %s1027_s30 }
 0x29b   : > { %s1252_s24 = smov %s1016_s27  ;;  %19 = sbr.rel (!%p17_p7) target bundleno = 4 (0x4), region = 91 }
 0x2a2   :  { %690 = vsyncpa [#allocation4], 1 }
 0x2a3   :  { %692 = vsyncpa [#allocation4 + $0x1], 1 }
 0x2a4   :  { %693 = vsyncpa [#allocation5], 1 }
 0x2a5   :  { %695 = vsyncpa [#allocation5 + $0x1], 1 }

</bundles_post_ra>
